<compile_context>
chip_gen: v5e
topology: v5e:2x2
jax: 0.10.0
libtpu: 0.0.40
codegen_flags: <defaults>
</compile_context>

<pallas_src>
import functools

import jax
import jax.numpy as jnp
from jax.experimental import pallas as pl
from jax.experimental.pallas import tpu as pltpu

HIDDEN = 30        # hidden width of the torch module (nn.Linear(input_size, 30))
HIDDEN_PAD = 128   # padded to one full lane tile (resident in VMEM, cost-free)


def _round_up(x, m):
    return (x + m - 1) // m * m


def _num_tensorcores():
    """2 TCs per chip on v7x, 1 on v5e/v6e (best-effort; default 1)."""
    try:
        kind = jax.devices()[0].device_kind.lower()
    except Exception:
        return 1
    return 2 if "v7" in kind else 1


def _network_kernel(x_ref, w1_ref, b1_ref, w2_ref, b2_ref, out_ref):
    """One batch tile of: relu(x @ W1 + b1) @ W2 + b2 (all operands in VMEM).

    x_ref:  (tb, input_size)
    w1_ref: (input_size, HIDDEN_PAD)   b1_ref: (1, HIDDEN_PAD)
    w2_ref: (HIDDEN_PAD, nb_action)    b2_ref: (1, nb_action)
    out_ref:(tb, nb_action)
    """
    x = x_ref[...]
    # fc1 + ReLU (MXU matmul, full-f32 precision; padded hidden lanes stay 0)
    h = jnp.dot(x, w1_ref[...],
                preferred_element_type=jnp.float32,
                precision=jax.lax.Precision.HIGHEST)
    h = jnp.maximum(h + b1_ref[...], 0.0)
    # fc2 — narrow (nb_action-wide) result, stored un-padded.
    q = jnp.dot(h, w2_ref[...],
                preferred_element_type=jnp.float32,
                precision=jax.lax.Precision.HIGHEST)
    out_ref[...] = (q + b2_ref[...]).astype(out_ref.dtype)
    # TODO(synk): for the B<=8 action-selection path, optionally fuse the
    # argmax over nb_action here and return the action index directly.


@functools.partial(jax.jit, static_argnames=("tile_b",))
def network_forward(state, w1p, b1p, w2p, b2p, *, tile_b=2048):
    """Batched forward pass.

    state: (B, input_size) f32
    w1p/b1p/w2p/b2p: hidden-padded params from `pad_params`.
    Returns (B, nb_action) Q-values.
    """
    batch, input_size = state.shape
    nb_action = w2p.shape[1]

    # Tile selection: one grid step per TensorCore (2 on v7x, 1 on v5e/v6e),
    # but never more steps than the batch supports and never a tile > tile_b.
    num_tc = _num_tensorcores()
    target_steps = max(1, min(num_tc, pl.cdiv(batch, 8)))
    tb = max(8, min(tile_b, _round_up(pl.cdiv(batch, target_steps), 8)))
    grid = (pl.cdiv(batch, tb),)   # partial edge block handled by Pallas masking

    flops = 2 * batch * (input_size * HIDDEN_PAD + HIDDEN_PAD * nb_action)
    bytes_accessed = 4 * (batch * input_size                      # state in
                          + input_size * HIDDEN_PAD + HIDDEN_PAD  # W1, b1
                          + HIDDEN_PAD * nb_action + nb_action    # W2, b2
                          + batch * nb_action)                    # q out

    return pl.pallas_call(
        _network_kernel,
        out_shape=jax.ShapeDtypeStruct((batch, nb_action), jnp.float32),
        grid=grid,
        in_specs=[
            # state: streamed / double-buffered along the batch grid axis
            pl.BlockSpec((tb, input_size), lambda i: (i, 0)),
            # weights & biases: constant index_map -> resident in VMEM
            pl.BlockSpec((input_size, HIDDEN_PAD), lambda i: (0, 0)),
            pl.BlockSpec((1, HIDDEN_PAD), lambda i: (0, 0)),
            pl.BlockSpec((HIDDEN_PAD, nb_action), lambda i: (0, 0)),
            pl.BlockSpec((1, nb_action), lambda i: (0, 0)),
        ],
        out_specs=pl.BlockSpec((tb, nb_action), lambda i: (i, 0)),
        compiler_params=pltpu.CompilerParams(
            dimension_semantics=("parallel",),   # v7x: shard batch tiles across TCs
        ),
        cost_estimate=pl.CostEstimate(
            flops=flops, transcendentals=0, bytes_accessed=bytes_accessed),
    )(state, w1p, b1p, w2p, b2p)


def init_params(key, input_size, nb_action, hidden=HIDDEN):
    """nn.Linear-style init: uniform(-1/sqrt(fan_in), 1/sqrt(fan_in)).
    Weights stored (in_features, out_features) — transposed vs torch."""
    k1, k2, k3, k4 = jax.random.split(key, 4)
    bound1 = 1.0 / jnp.sqrt(input_size)
    bound2 = 1.0 / jnp.sqrt(hidden)
    w1 = jax.random.uniform(k1, (input_size, hidden), jnp.float32, -bound1, bound1)
    b1 = jax.random.uniform(k2, (1, hidden), jnp.float32, -bound1, bound1)
    w2 = jax.random.uniform(k3, (hidden, nb_action), jnp.float32, -bound2, bound2)
    b2 = jax.random.uniform(k4, (1, nb_action), jnp.float32, -bound2, bound2)
    return w1, b1, w2, b2


def pad_params(w1, b1, w2, b2):
    """Zero-pad the hidden dim to 128 (done once at init). Padded hidden lanes
    produce relu(0)=0 against zero W2 rows, so the math is unchanged. The
    action dim is left un-padded so the output store/writeback stays small."""
    input_size, hidden = w1.shape
    nb_action = w2.shape[1]
    w1p = jnp.zeros((input_size, HIDDEN_PAD), jnp.float32).at[:, :hidden].set(w1)
    b1p = jnp.zeros((1, HIDDEN_PAD), jnp.float32).at[:, :hidden].set(b1.reshape(1, -1))
    w2p = jnp.zeros((HIDDEN_PAD, nb_action), jnp.float32).at[:hidden, :].set(w2)
    b2p = b2.reshape(1, nb_action).astype(jnp.float32)
    return w1p, b1p, w2p, b2p


if __name__ == "__main__":
    input_size, nb_action = 5, 3

    key = jax.random.PRNGKey(0)
    k_small, k_mid, k_big, k_params = jax.random.split(key, 4)

    w1, b1, w2, b2 = init_params(k_params, input_size, nb_action)
    w1p, b1p, w2p, b2p = pad_params(w1, b1, w2, b2)   # one-time padding

    def ref_forward(s):  # plain-JAX reference (same math as the torch forward)
        h = jnp.maximum(
            jnp.dot(s, w1, precision=jax.lax.Precision.HIGHEST) + b1, 0.0)
        return jnp.dot(h, w2, precision=jax.lax.Precision.HIGHEST) + b2

    # --- small path (DQN action selection, batch=2; exercises masked edge block) ---
    state_small = jax.random.normal(k_small, (2, input_size), jnp.float32)
    q_small = network_forward(state_small, w1p, b1p, w2p, b2p)
    jax.block_until_ready(q_small)
    assert q_small.shape == (2, nb_action)
    assert jnp.allclose(q_small, ref_forward(state_small), atol=1e-5, rtol=1e-5)

    # --- odd batch (exercises partial-block masking on the output writeback) ---
    state_mid = jax.random.normal(k_mid, (37, input_size), jnp.float32)
    q_mid = network_forward(state_mid, w1p, b1p, w2p, b2p)
    jax.block_until_ready(q_mid)
    assert q_mid.shape == (37, nb_action)
    assert jnp.allclose(q_mid, ref_forward(state_mid), atol=1e-5, rtol=1e-5)

    # --- batched path (replay-buffer minibatch) ---
    state_big = jax.random.normal(k_big, (1024, input_size), jnp.float32)
    q_big = network_forward(state_big, w1p, b1p, w2p, b2p)
    jax.block_until_ready(q_big)
    assert q_big.shape == (1024, nb_action)
    assert jnp.allclose(q_big, ref_forward(state_big), atol=1e-5, rtol=1e-5)

    print("KERNEL_OK")
</pallas_src>

<mosaic_0001>
module attributes {stable_mosaic.version = 11 : i64} {
  func.func @_network_kernel(%arg0: i32, %arg1: memref<8x5xf32, #tpu.memory_space<vmem>>, %arg2: memref<5x128xf32, #tpu.memory_space<vmem>>, %arg3: memref<1x128xf32, #tpu.memory_space<vmem>>, %arg4: memref<128x3xf32, #tpu.memory_space<vmem>>, %arg5: memref<1x3xf32, #tpu.memory_space<vmem>>, %arg6: memref<8x3xf32, #tpu.memory_space<vmem>>) attributes {dimension_semantics = [#tpu.dimension_semantics<parallel>], iteration_bounds = array<i64: 1>, scalar_prefetch = 0 : i64, scratch_operands = 0 : i64, tpu.core_type = #tpu.core_type<tc>, window_params = [{transform_indices = @transform_0, window_bounds = array<i64: 8, 5>}, {pipeline_mode = #tpu.pipeline_mode<synchronous>, transform_indices = @transform_1, window_bounds = array<i64: 5, 128>}, {pipeline_mode = #tpu.pipeline_mode<synchronous>, transform_indices = @transform_2, window_bounds = array<i64: 1, 128>}, {pipeline_mode = #tpu.pipeline_mode<synchronous>, transform_indices = @transform_3, window_bounds = array<i64: 128, 3>}, {pipeline_mode = #tpu.pipeline_mode<synchronous>, transform_indices = @transform_4, window_bounds = array<i64: 1, 3>}, {transform_indices = @transform_5, window_bounds = array<i64: 8, 3>}]} {
    %c0 = arith.constant 0 : index
    %c0_0 = arith.constant 0 : index
    %0 = vector.load %arg1[%c0, %c0_0] : memref<8x5xf32, #tpu.memory_space<vmem>>, vector<8x5xf32>
    %c0_1 = arith.constant 0 : index
    %c0_2 = arith.constant 0 : index
    %1 = vector.load %arg2[%c0_1, %c0_2] : memref<5x128xf32, #tpu.memory_space<vmem>>, vector<5x128xf32>
    %cst = arith.constant dense<0.000000e+00> : vector<8x128xf32>
    %2 = tpu.matmul %0, %1, %cst {dimension_numbers = #tpu.dot_dimension_numbers<[1], [0], [0], [1], [0, 0, 1, 1], [], []>, precision = #tpu.contract_precision<fp32>} : vector<8x5xf32>, vector<5x128xf32>, vector<8x128xf32> -> vector<8x128xf32>
    %c0_3 = arith.constant 0 : index
    %c0_4 = arith.constant 0 : index
    %3 = vector.load %arg3[%c0_3, %c0_4] : memref<1x128xf32, #tpu.memory_space<vmem>>, vector<1x128xf32>
    %4 = vector.broadcast %3 : vector<1x128xf32> to vector<8x128xf32>
    %5 = arith.addf %2, %4 : vector<8x128xf32>
    %cst_5 = arith.constant 0.000000e+00 : f32
    %6 = vector.broadcast %cst_5 : f32 to vector<8x128xf32>
    %7 = arith.maximumf %5, %6 : vector<8x128xf32>
    %c0_6 = arith.constant 0 : index
    %c0_7 = arith.constant 0 : index
    %8 = vector.load %arg4[%c0_6, %c0_7] : memref<128x3xf32, #tpu.memory_space<vmem>>, vector<128x3xf32>
    %cst_8 = arith.constant dense<0.000000e+00> : vector<8x3xf32>
    %9 = tpu.matmul %7, %8, %cst_8 {dimension_numbers = #tpu.dot_dimension_numbers<[1], [0], [0], [1], [0, 0, 1, 1], [], []>, precision = #tpu.contract_precision<fp32>} : vector<8x128xf32>, vector<128x3xf32>, vector<8x3xf32> -> vector<8x3xf32>
    %c0_9 = arith.constant 0 : index
    %c0_10 = arith.constant 0 : index
    %10 = vector.load %arg5[%c0_9, %c0_10] : memref<1x3xf32, #tpu.memory_space<vmem>>, vector<1x3xf32>
    %11 = vector.broadcast %10 : vector<1x3xf32> to vector<8x3xf32>
    %12 = arith.addf %9, %11 : vector<8x3xf32>
    %c0_11 = arith.constant 0 : index
    %c0_12 = arith.constant 0 : index
    %13 = vector.load %arg6[%c0_11, %c0_12] : memref<8x3xf32, #tpu.memory_space<vmem>>, vector<8x3xf32>
    tpu.vector_store %arg6[%c0_11, %c0_12], %12 {strides = array<i32>} : memref<8x3xf32, #tpu.memory_space<vmem>>, vector<8x3xf32>,
    return
  }
  func.func @transform_0(%arg0: i32) -> (i32, i32) {
    %c0_i32 = arith.constant 0 : i32
    %c0_i32_0 = arith.constant 0 : i32
    return %arg0, %c0_i32 : i32, i32
  }
  func.func @transform_1(%arg0: i32) -> (i32, i32) {
    %c0_i32 = arith.constant 0 : i32
    %c0_i32_0 = arith.constant 0 : i32
    %c0_i32_1 = arith.constant 0 : i32
    return %c0_i32, %c0_i32_0 : i32, i32
  }
  func.func @transform_2(%arg0: i32) -> (i32, i32) {
    %c0_i32 = arith.constant 0 : i32
    %c0_i32_0 = arith.constant 0 : i32
    %c0_i32_1 = arith.constant 0 : i32
    return %c0_i32, %c0_i32_0 : i32, i32
  }
  func.func @transform_3(%arg0: i32) -> (i32, i32) {
    %c0_i32 = arith.constant 0 : i32
    %c0_i32_0 = arith.constant 0 : i32
    %c0_i32_1 = arith.constant 0 : i32
    return %c0_i32, %c0_i32_0 : i32, i32
  }
  func.func @transform_4(%arg0: i32) -> (i32, i32) {
    %c0_i32 = arith.constant 0 : i32
    %c0_i32_0 = arith.constant 0 : i32
    %c0_i32_1 = arith.constant 0 : i32
    return %c0_i32, %c0_i32_0 : i32, i32
  }
  func.func @transform_5(%arg0: i32) -> (i32, i32) {
    %c0_i32 = arith.constant 0 : i32
    %c0_i32_0 = arith.constant 0 : i32
    return %arg0, %c0_i32 : i32, i32
  }
}

</mosaic_0001>

<bundles_post_ra>
// kernel: network_forward.1
= control target key start
LH: loop header
LB: loop body
LE: loop exit
PB: predicated region body
PF: predicated region fallthrough
CT: control target
= control target key end

     0   :  { %10 = vsyncpa [#allocation3], 0  ;;  %vm31_vm0 = vcmask 1044480   ;;  %vm27_vm1 = vcmask 39936   ;;  %vm543_vm2 = vcmask 23552   ;;  %s936_s0 = inlined_call_operand.vmem [shape: f32[2,5], index: 0, kind: input, shape index: {}]   ;;  %s937_s1 = inlined_call_operand.vmem [shape: f32[5,128], index: 1, kind: input, shape index: {}]   ;;  %s938_s2 = inlined_call_operand.vmem [shape: f32[1,128], index: 2, kind: input, shape index: {}]   ;;  %s939_s3 = inlined_call_operand.vmem [shape: f32[128,3], index: 3, kind: input, shape index: {}]   ;;  %s940_s4 = inlined_call_operand.vmem [shape: f32[1,3], index: 4, kind: input, shape index: {}]   ;;  %s941_s5 = inlined_call_operand.hbm [shape: f32[2,3], index: 5, kind: output, shape index: {}]  }
   0x1   :  { %v22_v0 = vld [vmem:[%s937_s1] sm:$0x1f]  ;;  %v197_v3 = vld [vmem:[%s939_s3 + $0x78] sm:$0xff]  ;;  %v196_v4 = vld [vmem:[%s939_s3 + $0x70] sm:$0xff] }
   0x2   :  { %v21_v1 = vld [vmem:[%s936_s0] sm:$0xff]  ;;  %v33_v2 = vsel %vm31_vm0, %v22_v0, 0  ;;  %v195_v5 = vld [vmem:[%s939_s3 + $0x68] sm:$0xff]  ;;  %v644_v8 = vand.u32 4294901760, %v197_v3  ;;  %v646_v9 = vand.u32 4294901760, %v196_v4  ;;  %v193_v11 = vld [vmem:[%s939_s3 + $0x58] sm:$0xff] }
   0x3   :  { %v642_v6 = vand.u32 4294901760, %v33_v2  ;;  %v29_v7 = vsel %vm27_vm1, %v21_v1, 0  ;;  %v194_v10 = vld [vmem:[%s939_s3 + $0x60] sm:$0xff]  ;;  %v656_v13 = vand.u32 4294901760, %v195_v5  ;;  %v660_v15 = vand.u32 4294901760, %v193_v11  ;;  %v192_v16 = vld [vmem:[%s939_s3 + $0x50] sm:$0xff] }
   0x4   :  { %v654_v12 = vand.u32 4294901760, %v29_v7  ;;  %v658_v14 = vand.u32 4294901760, %v194_v10  ;;  %v668_v18 = vsub.f32 %v197_v3, %v644_v8  ;;  %v671_v19 = vsub.f32 %v196_v4, %v646_v9  ;;  %203 = vmatpush.msra.mxu2 %v644_v8  ;;  %v191_v38 = vld [vmem:[%s939_s3 + $0x48] sm:$0xff]  ;;  %v190_v39 = vld [vmem:[%s939_s3 + $0x40] sm:$0xff]  ;;  %v189_v40 = vld [vmem:[%s939_s3 + $0x38] sm:$0xff] }
   0x5   :  { %51 = vmatpush.msra.mxu0 %v642_v6  ;;  %v77_v17 = vsub.f32 %v33_v2, %v642_v6  ;;  %v674_v20 = vand.u32 4294901760, %v192_v16  ;;  %v680_v22 = vsub.f32 %v195_v5, %v656_v13  ;;  %v686_v24 = vsub.f32 %v193_v11, %v660_v15  ;;  %v188_v43 = vld [vmem:[%s939_s3 + $0x30] sm:$0xff]  ;;  %v187_v48 = vld [vmem:[%s939_s3 + $0x28] sm:$0xff]  ;;  %v186_v55 = vld [vmem:[%s939_s3 + $0x20] sm:$0xff] }
   0x6   :  { %v677_v21 = vsub.f32 %v29_v7, %v654_v12  ;;  %v683_v23 = vsub.f32 %v194_v10, %v658_v14  ;;  %v245_v26 = vand.u32 4294901760, %v668_v18  ;;  %v251_v27 = vand.u32 4294901760, %v671_v19  ;;  %205 = vmatpush.msra.mxu2 %v646_v9  ;;  %v185_v62 = vld [vmem:[%s939_s3 + $0x18] sm:$0xff]  ;;  %v184_v4 = vld [vmem:[%s939_s3 + $0x10] sm:$0xff]  ;;  %v183_v11 = vld [vmem:[%s939_s3 + $0x8] sm:$0xff] }
   0x7   :  { %104 = vmatpush.msrb.mxu0 %v77_v17  ;;  %v78_v25 = vand.u32 4294901760, %v77_v17  ;;  %v257_v29 = vand.u32 4294901760, %v680_v22  ;;  %v695_v31 = vsub.f32 %v192_v16, %v674_v20  ;;  %v269_v37 = vand.u32 4294901760, %v686_v24 }
   0x8   :  { %v54_v28 = vand.u32 4294901760, %v677_v21  ;;  %v263_v30 = vand.u32 4294901760, %v683_v23  ;;  %v246_v33 = vsub.f32 %v668_v18, %v245_v26  ;;  %v252_v34 = vsub.f32 %v671_v19, %v251_v27  ;;  %207 = vmatpush.msra.mxu2 %v656_v13 }
   0x9   :  { %v79_v32 = vsub.f32 %v77_v17, %v78_v25  ;;  %v258_v36 = vsub.f32 %v680_v22, %v257_v29  ;;  %v275_v47 = vand.u32 4294901760, %v695_v31  ;;  %v731_v49 = vand.u32 4294901760, %v191_v38 }
   0xa   :  { %v55_v35 = vsub.f32 %v677_v21, %v54_v28  ;;  %v247_v42 = vand.u32 4294901760, %v246_v33  ;;  %209 = vmatpush.msra.mxu2 %v658_v14  ;;  %v253_v45 = vand.u32 4294901760, %v252_v34  ;;  %v264_v46 = vsub.f32 %v683_v23, %v263_v30 }
   0xb   :  { %v80_v41 = vand.u32 4294901760, %v79_v32  ;;  %v733_v50 = vand.u32 4294901760, %v190_v39  ;;  %v735_v51 = vand.u32 4294901760, %v189_v40  ;;  %v259_v52 = vand.u32 4294901760, %v258_v36 }
   0xc   :  { %v56_v44 = vand.u32 4294901760, %v55_v35  ;;  %248 = vmatpush.msra.mxu3 %v247_v42  ;;  %v270_v53 = vsub.f32 %v686_v24, %v269_v37  ;;  %v741_v54 = vand.u32 4294901760, %v188_v43  ;;  %v748_v56 = vsub.f32 %v191_v38, %v731_v49  ;;  %211 = vmatpush.msra.mxu2 %v660_v15 }
   0xd   :  { %81 = vmatpush.msra.mxu1 %v80_v41  ;;  %v751_v57 = vsub.f32 %v190_v39, %v733_v50  ;;  %v754_v58 = vsub.f32 %v189_v40, %v735_v51  ;;  %v756_v59 = vand.u32 4294901760, %v187_v48  ;;  %v265_v60 = vand.u32 4294901760, %v264_v46 }
   0xe   :  { %57 = vmatmul.f32.vlgmr.msra.gmra.mxu0 %v56_v44  ;;  %83 = vmatmul.f32.vlgmr.msra.gmra.mxu1 %v654_v12  ;;  %v276_v61 = vsub.f32 %v695_v31, %v275_v47  ;;  %v281_v63 = vand.u32 4294901760, %v748_v56  ;;  %v769_v1 = vsub.f32 %v188_v43, %v741_v54  ;;  %v771_v2 = vand.u32 4294901760, %v186_v55 }
   0xf   :  { %127 = vmatpush.msrb.mxu1 %v642_v6  ;;  %153 = vmatpush.msra.mxu0 %v78_v25  ;;  %v287_v0 = vand.u32 4294901760, %v751_v57  ;;  %v271_v3 = vand.u32 4294901760, %v270_v53  ;;  %v782_v7 = vsub.f32 %v187_v48, %v756_v59  ;;  %v784_v10 = vand.u32 4294901760, %v185_v62 }
  0x10   :  { %254 = vmatpush.msra.mxu3 %v253_v45  ;;  %v282_v5 = vsub.f32 %v748_v56, %v281_v63  ;;  %213 = vmatpush.msra.mxu2 %v674_v20  ;;  %v277_v16 = vand.u32 4294901760, %v276_v61  ;;  %v299_v25 = vand.u32 4294901760, %v769_v1  ;;  %v795_v32 = vsub.f32 %v186_v55, %v771_v2 }
  0x11   :  { %175 = vmatpush.msra.mxu1 %v642_v6  ;;  %v293_v6 = vand.u32 4294901760, %v754_v58  ;;  %v288_v17 = vsub.f32 %v751_v57, %v287_v0  ;;  %v797_v33 = vand.u32 4294901760, %v184_v4  ;;  %v802_v34 = vand.u32 4294901760, %v183_v11 }
  0x12   :  { %260 = vmatpush.msra.mxu3 %v259_v52  ;;  %215 = vmatpush.msra.mxu2 %v731_v49  ;;  %v283_v35 = vand.u32 4294901760, %v282_v5  ;;  %v305_v38 = vand.u32 4294901760, %v782_v7  ;;  %v810_v39 = vsub.f32 %v185_v62, %v784_v10  ;;  %v311_v40 = vand.u32 4294901760, %v795_v32 }
  0x13   :  { %v294_v36 = vsub.f32 %v754_v58, %v293_v6  ;;  %v820_v41 = vsub.f32 %v184_v4, %v797_v33  ;;  %v830_v45 = vsub.f32 %v183_v11, %v802_v34  ;;  %v182_v11 = vld [vmem:[%s939_s3] sm:$0xff] }
  0x14   :  { %266 = vmatpush.msra.mxu3 %v265_v60  ;;  %217 = vmatpush.msra.mxu2 %v733_v50  ;;  %v306_v43 = vsub.f32 %v782_v7, %v305_v38  ;;  %v317_v44 = vand.u32 4294901760, %v810_v39  ;;  %v312_v48 = vsub.f32 %v795_v32, %v311_v40 }
  0x15   :  { %v295_v42 = vand.u32 4294901760, %v294_v36  ;;  %v323_v52 = vand.u32 4294901760, %v820_v41  ;;  %v329_v60 = vand.u32 4294901760, %v830_v45 }
  0x16   :  { %107 = vmatmul.f32.vlgmr.msrb.gmra.mxu0 %v677_v21  ;;  %131 = vmatmul.f32.vlgmr.msrb.gmra.mxu1 %v54_v28  ;;  %v289_v21 = vand.u32 4294901760, %v288_v17  ;;  %v300_v28 = vsub.f32 %v769_v1, %v299_v25  ;;  %v307_v53 = vand.u32 4294901760, %v306_v43  ;;  %v318_v55 = vsub.f32 %v810_v39, %v317_v44 }
  0x17   :  { %272 = vmatpush.msra.mxu3 %v271_v3  ;;  %346 = vmatpush.msrb.mxu0 %v668_v18  ;;  %v313_v61 = vand.u32 4294901760, %v312_v48  ;;  %v330_v3 = vsub.f32 %v830_v45, %v329_v60 }
  0x18   :  { %399 = vmatpush.msrb.mxu1 %v644_v8  ;;  %219 = vmatpush.msra.mxu2 %v735_v51  ;;  %v301_v46 = vand.u32 4294901760, %v300_v28  ;;  %v319_v62 = vand.u32 4294901760, %v318_v55 }
  0x19   :  { %278 = vmatpush.msra.mxu3 %v277_v16  ;;  %349 = vmatpush.msrb.mxu0 %v671_v19  ;;  %v331_v5 = vand.u32 4294901760, %v330_v3  ;;  %v232_v16 = vand.u32 4294901760, %v182_v11 }
  0x1a   :  { %401 = vmatpush.msrb.mxu1 %v646_v9  ;;  %221 = vmatpush.msra.mxu2 %v741_v54 }
  0x1b   :  { %284 = vmatpush.msra.mxu3 %v283_v35  ;;  %352 = vmatpush.msrb.mxu0 %v680_v22  ;;  %v334_v17 = vsub.f32 %v182_v11, %v232_v16 }
  0x1c   :  { %403 = vmatpush.msrb.mxu1 %v656_v13  ;;  %223 = vmatpush.msra.mxu2 %v756_v59 }
  0x1d   :  { %290 = vmatpush.msra.mxu3 %v289_v21  ;;  %355 = vmatpush.msrb.mxu0 %v683_v23  ;;  %v335_v35 = vand.u32 4294901760, %v334_v17 }
  0x1e   :  { %155 = vmatmul.f32.vlgmr.msra.gmra.mxu0 %v654_v12  ;;  %177 = vmatmul.f32.vlgmr.msra.gmra.mxu1 %v654_v12  ;;  %v324_v12 = vsub.f32 %v820_v41, %v323_v52 }
  0x1f   :  { %296 = vmatpush.msra.mxu3 %v295_v42  ;;  %225 = vmatpush.msra.mxu2 %v771_v2  ;;  %v336_v36 = vsub.f32 %v334_v17, %v335_v35 }
  0x20   :  { %405 = vmatpush.msrb.mxu1 %v658_v14  ;;  %358 = vmatpush.msrb.mxu0 %v686_v24  ;;  %v325_v4 = vand.u32 4294901760, %v324_v12 }
  0x21   :  { %302 = vmatpush.msra.mxu3 %v301_v46  ;;  %227 = vmatpush.msra.mxu2 %v784_v10  ;;  %v337_v21 = vand.u32 4294901760, %v336_v36 }
  0x22   :  { %407 = vmatpush.msrb.mxu1 %v660_v15  ;;  %361 = vmatpush.msrb.mxu0 %v695_v31 }
  0x23   :  { %308 = vmatpush.msra.mxu3 %v307_v53  ;;  %229 = vmatpush.msra.mxu2 %v797_v33 }
  0x24   :  { %409 = vmatpush.msrb.mxu1 %v674_v20  ;;  %364 = vmatpush.msrb.mxu0 %v748_v56 }
  0x25   :  { %314 = vmatpush.msra.mxu3 %v313_v61  ;;  %231 = vmatpush.msra.mxu2 %v802_v34 }
  0x26   :  { %411 = vmatpush.msrb.mxu1 %v731_v49  ;;  %367 = vmatpush.msrb.mxu0 %v751_v57 }
  0x27   :  { %320 = vmatpush.msra.mxu3 %v319_v62  ;;  %233 = vmatpush.msra.mxu2 %v232_v16 }
  0x28   :  { %413 = vmatpush.msrb.mxu1 %v733_v50  ;;  %370 = vmatpush.msrb.mxu0 %v754_v58 }
  0x29   :  { %326 = vmatpush.msra.mxu3 %v325_v4  ;;  %440 = vmatpush.msrb.mxu2 %v245_v26 }
  0x2a   :  { %415 = vmatpush.msrb.mxu1 %v735_v51  ;;  %373 = vmatpush.msrb.mxu0 %v769_v1 }
  0x2b   :  { %332 = vmatpush.msra.mxu3 %v331_v5  ;;  %444 = vmatpush.msrb.mxu2 %v251_v27 }
  0x2c   :  { %417 = vmatpush.msrb.mxu1 %v741_v54  ;;  %376 = vmatpush.msrb.mxu0 %v782_v7 }
  0x2d   :  { %448 = vmatpush.msrb.mxu2 %v257_v29  ;;  %338 = vmatpush.msra.mxu3 %v337_v21 }
  0x2e   :  { %419 = vmatpush.msrb.mxu1 %v756_v59  ;;  %379 = vmatpush.msrb.mxu0 %v795_v32 }
  0x2f   :  { %452 = vmatpush.msrb.mxu2 %v263_v30  ;;  %507 = vmatpush.msrb.mxu3 %v644_v8 }
  0x30   :  { %421 = vmatpush.msrb.mxu1 %v771_v2  ;;  %382 = vmatpush.msrb.mxu0 %v810_v39 }
  0x31   :  { %456 = vmatpush.msrb.mxu2 %v269_v37  ;;  %509 = vmatpush.msrb.mxu3 %v646_v9 }
  0x32   :  { %423 = vmatpush.msrb.mxu1 %v784_v10  ;;  %385 = vmatpush.msrb.mxu0 %v820_v41 }
  0x33   :  { %460 = vmatpush.msrb.mxu2 %v275_v47  ;;  %511 = vmatpush.msrb.mxu3 %v656_v13  ;;  %v566_v13 = vld [vmem:[%s938_s2] ss:$0 sm:$0xff] }
  0x34   :  { %425 = vmatpush.msrb.mxu1 %v797_v33  ;;  %388 = vmatpush.msrb.mxu0 %v830_v45 }
  0x35   :  { %464 = vmatpush.msrb.mxu2 %v281_v63  ;;  %513 = vmatpush.msrb.mxu3 %v658_v14 }
  0x36   :  { %427 = vmatpush.msrb.mxu1 %v802_v34  ;;  %391 = vmatpush.msrb.mxu0 %v334_v17 }
  0x37   :  { %468 = vmatpush.msrb.mxu2 %v287_v0  ;;  %515 = vmatpush.msrb.mxu3 %v660_v15 }
  0x38   :  { %429 = vmatpush.msrb.mxu1 %v232_v16 }
  0x39   :  { %472 = vmatpush.msrb.mxu2 %v293_v6  ;;  %517 = vmatpush.msrb.mxu3 %v674_v20 }
  0x3b   :  { %476 = vmatpush.msrb.mxu2 %v299_v25  ;;  %519 = vmatpush.msrb.mxu3 %v731_v49 }
  0x3d   :  { %480 = vmatpush.msrb.mxu2 %v305_v38  ;;  %521 = vmatpush.msrb.mxu3 %v733_v50  ;;  %v567_v50 = vld [vmem:[%s940_s4] ss:$0 sm:$0xff] }
  0x3f   :  { %484 = vmatpush.msrb.mxu2 %v311_v40  ;;  %523 = vmatpush.msrb.mxu3 %v735_v51 }
  0x41   :  { %488 = vmatpush.msrb.mxu2 %v317_v44  ;;  %525 = vmatpush.msrb.mxu3 %v741_v54 }
  0x43   :  { %492 = vmatpush.msrb.mxu2 %v323_v52  ;;  %527 = vmatpush.msrb.mxu3 %v756_v59 }
  0x45   :  { %496 = vmatpush.msrb.mxu2 %v329_v60  ;;  %529 = vmatpush.msrb.mxu3 %v771_v2 }
  0x47   :  { %500 = vmatpush.msrb.mxu2 %v335_v35  ;;  %531 = vmatpush.msrb.mxu3 %v784_v10 }
  0x49   :  { %533 = vmatpush.msrb.mxu3 %v797_v33 }
  0x4b   :  { %535 = vmatpush.msrb.mxu3 %v802_v34 }
  0x4d   :  { %537 = vmatpush.msrb.mxu3 %v232_v16 }
  0x8b   :  { %v58_v8 = vpop.f32.mrf.mxu0  ;;  %v84_v9 = vpop.f32.mrf.mxu1 }
  0x8c   :  { %v59_v14 = vadd.f32 %v566_v13, %v58_v8 }
  0x8e   :  { %v85_v19 = vadd.f32 %v84_v9, %v59_v14 }
  0x93   :  { %v108_v15 = vpop.f32.mrf.mxu0  ;;  %v132_v18 = vpop.f32.mrf.mxu1 }
  0x94   :  { %v109_v20 = vadd.f32 %v108_v15, %v85_v19 }
  0x96   :  { %v133_v22 = vadd.f32 %v132_v18, %v109_v20 }
  0x9b   :  { %v156_v23 = vpop.f32.mrf.mxu0  ;;  %v178_v24 = vpop.f32.mrf.mxu1 }
  0x9c   :  { %v157_v26 = vadd.f32 %v156_v23, %v133_v22 }
  0x9e   :  { %v179_v27 = vadd.f32 %v178_v24, %v157_v26 }
  0xa0   :  { %v181_v29 = vmax.f32 %v179_v27, 0.0 }
  0xa2   :  { %v234_v30 = vand.u32 4294901760, %v181_v29 }
  0xa4   :  { %v235_v31 = vsub.f32 %v181_v29, %v234_v30  ;;  %340 = vmatmul.f32.vlgmr.msra.gmra.mxu3 %v234_v30 }
  0xa6   :  { %394 = vmatmul.f32.vlgmr.msrb.gmra.mxu0 %v235_v31  ;;  %v236_v37 = vand.u32 4294901760, %v235_v31 }
  0xa8   :  { %433 = vmatmul.f32.vlgmr.msrb.gmra.mxu1 %v236_v37  ;;  %v237_v47 = vsub.f32 %v235_v31, %v236_v37 }
  0xaa   :  { %v238_v49 = vand.u32 4294901760, %v237_v47 }
  0xac   :  { %239 = vmatmul.f32.vlgmr.msra.gmra.mxu2 %v238_v49  ;;  %539 = vmatmul.f32.vlgmr.msrb.gmra.mxu3 %v234_v30 }
  0xb4   :  { %502 = vmatmul.f32.vlgmr.msrb.gmra.mxu2 %v234_v30 }
 0x123   :  { %v395_v58 = vpop.f32.mrf.mxu0 }
 0x125   :  { %v434_v63 = vpop.f32.mrf.mxu1 }
 0x127   :  { %v341_v51 = vpop.f32.mrf.mxu3 }
 0x12f   :  { %v240_v54 = vpop.f32.mrf.mxu2  ;;  %v540_v6 = vpop.f32.mrf.mxu3 }
 0x130   :  { %v241_v56 = vadd.f32 %v567_v50, %v240_v54 }
 0x132   :  { %v342_v57 = vadd.f32 %v341_v51, %v241_v56 }
 0x134   :  { %v396_v59 = vadd.f32 %v395_v58, %v342_v57 }
 0x136   :  { %v435_v0 = vadd.f32 %v434_v63, %v396_v59 }
 0x137   :  { %v503_v1 = vpop.f32.mrf.mxu2 }
 0x138   :  { %v504_v2 = vadd.f32 %v503_v1, %v435_v0 }
 0x13a   :  { %v541_v7 = vadd.f32 %v540_v6, %v504_v2 }
 0x13c   :  { %544 = vst.msk [vmem:[#allocation2] sm:$0xff] %vm543_vm2, %v541_v7 }
 0x13d   :  { %548 = vsyncadd [#allocation3], 96  ;;  %s551_s29 = sshll.u32 %s941_s5, 4  ;;  %s594_s4 = smov [#allocation2]   ;;  %s552_s29 = int_to_ptr.hbm [resolvable:$true] %s551_s29 }
 0x13e   :  { %s549_s30 = sshll.u32 %s594_s4, 4  ;;  %s595_s6 = smov 32   ;;  %s550_s30 = int_to_ptr.vmem [resolvable:$true] %s549_s30 }
 0x13f   :  { %s596_s7 = smov 2  }
 0x140   :  { %557 = dma.vmem_to_hbm [thread:$0]  %s550_s30, 32, %s552_s29, [#allocation3], %s595_s6, %s595_s6, %s596_s7  }
 0x141   :  { %592 = dma.done.wait [#allocation3], 128  }
 0x142   :  { %593 = vsyncadd [#allocation3], 4294967168 }
 0x143   :  { %562 = vsyncpa [#allocation3], 1 }

</bundles_post_ra>
